<compile_context>
chip_gen: v7x
topology: tpu7x:2x2x1
jax: 0.10.0
libtpu: 0.0.40
codegen_flags: <defaults>
</compile_context>

<pallas_src>
import functools
import math

import jax
import jax.numpy as jnp
from jax import lax
from jax.experimental import pallas as pl
from jax.experimental.pallas import tpu as pltpu

EPS = 1e-5


def _packed_ln_kernel(x_ref, seg_ref, gb_ref, o_ref, *, inv_c, x_is_bf16):
    """LayerNorm over C-wide lane segments of an L = pack*C lane-dense block.

    x_ref:   (tile, L) input block (pack consecutive LN rows per 128-lane row).
    seg_ref: (2L, L) bf16 [seg; seg], seg = block-diagonal 0/1 (C x C blocks).
    gb_ref:  (2, L) f32, row 0 = gamma tiled to the packed layout, row 1 = beta.
    """
    seg2 = seg_ref[...]                       # (2L, L) bf16
    L = seg2.shape[1]
    gb = gb_ref[...]                          # (2, L) f32
    x_raw = x_ref[...]
    x = x_raw.astype(jnp.float32)

    if x_is_bf16:
        # bf16 inputs are exactly representable: one L-deep MXU pass suffices.
        row_sum = jnp.dot(x_raw, seg2[:L, :], preferred_element_type=jnp.float32)
    else:
        # hi/lo bf16 split (combined representation error ~2^-17 relative),
        # fused into a single (tile, 2L) @ (2L, L) MXU pass.
        hi = x.astype(jnp.bfloat16)
        lo = (x - hi.astype(jnp.float32)).astype(jnp.bfloat16)
        row_sum = jnp.dot(jnp.concatenate([hi, lo], axis=-1), seg2,
                          preferred_element_type=jnp.float32)
    mean = row_sum * inv_c                    # already broadcast to every lane

    xc = x - mean
    sq = xc * xc
    hi2 = sq.astype(jnp.bfloat16)
    lo2 = (sq - hi2.astype(jnp.float32)).astype(jnp.bfloat16)
    var = jnp.dot(jnp.concatenate([hi2, lo2], axis=-1), seg2,
                  preferred_element_type=jnp.float32) * inv_c   # biased var

    y = xc * lax.rsqrt(var + EPS) * gb[0:1, :] + gb[1:2, :]     # rsqrt -> EUP
    o_ref[...] = y.astype(o_ref.dtype)


def _reduce_ln_kernel(x_ref, gb_ref, o_ref, *, inv_c):
    """Large-C fallback: LayerNorm over the full last axis via XLU reductions."""
    x = x_ref[...].astype(jnp.float32)
    gb = gb_ref[...]
    mean = jnp.sum(x, axis=-1, keepdims=True) * inv_c
    xc = x - mean
    var = jnp.sum(xc * xc, axis=-1, keepdims=True) * inv_c
    y = xc * lax.rsqrt(var + EPS) * gb[0:1, :] + gb[1:2, :]
    o_ref[...] = y.astype(o_ref.dtype)


def _row_tile(rows, width, block_rows):
    """Rows per grid step: <= block_rows, ~<=1 MiB blocks, >= ~8 grid steps."""
    if rows < 64:
        return rows                            # full extent, single step
    cap_1mib = max(8, (((1 << 20) // (width * 4)) // 8) * 8)
    eight_steps = ((pl.cdiv(rows, 8) + 7) // 8) * 8
    return max(8, min(block_rows, cap_1mib, eight_steps))


@functools.partial(jax.jit, static_argnames=("block_rows",))
def mylayernorm_forward(x, gamma, beta, *, block_rows=1024):
    """LayerNorm over the last axis of x (any rank), matching the PyTorch module."""
    orig_shape = x.shape
    c = x.shape[-1]
    x2 = x.reshape(-1, c)
    n = x2.shape[0]
    out_dtype = x.dtype
    itemsize = jnp.dtype(x2.dtype).itemsize
    block_rows = max(8, (int(block_rows) // 8) * 8)

    gamma32 = gamma.astype(jnp.float32).reshape(c)
    beta32 = beta.astype(jnp.float32).reshape(c)

    lcm = (c * 128) // math.gcd(c, 128)
    use_mxu = (c <= 256) and (lcm <= 512)

    if use_mxu:
        # ---------------- lane-dense packed MXU path (small C) ----------------
        L = lcm
        pack = L // c
        n_pad = pl.cdiv(n, pack) * pack
        xin = x2 if n_pad == n else jnp.pad(x2, ((0, n_pad - n), (0, 0)))
        rows = n_pad // pack
        xp = xin.reshape(rows, L)              # metadata-only when no pad needed

        tile = _row_tile(rows, L, block_rows)
        grid = (pl.cdiv(rows, tile),)

        # Block-diagonal 0/1 matrix, stacked twice for the fused hi|lo matmul:
        # (hi | lo) @ [seg; seg] == hi @ seg + lo @ seg.
        lane = jnp.arange(L, dtype=jnp.int32)
        seg = (lane[:, None] // c == lane[None, :] // c).astype(jnp.bfloat16)
        seg2 = jnp.concatenate([seg, seg], axis=0)            # (2L, L)

        gb = jnp.stack([jnp.tile(gamma32, pack), jnp.tile(beta32, pack)])  # (2, L)

        vmem_limit = int(min(40 << 20,
                             max(16 << 20,
                                 4 * tile * L * itemsize     # dbl-buffered in+out
                                 + 12 * tile * L * 4          # f32 intermediates
                                 + 2 * L * L * 2 + 2 * L * 4)))
        cost = pl.CostEstimate(
            flops=8 * rows * L * L + 12 * rows * L,
            transcendentals=rows * L,
            bytes_accessed=2 * rows * L * itemsize + 2 * L * L * 2 + 2 * L * 4)

        out = pl.pallas_call(
            functools.partial(_packed_ln_kernel, inv_c=1.0 / c,
                              x_is_bf16=(x2.dtype == jnp.bfloat16)),
            out_shape=jax.ShapeDtypeStruct((rows, L), out_dtype),
            grid_spec=pltpu.PrefetchScalarGridSpec(
                num_scalar_prefetch=0,
                grid=grid,
                in_specs=[
                    pl.BlockSpec((tile, L), lambda i: (i, 0)),
                    pl.BlockSpec((2 * L, L), lambda i: (0, 0)),
                    pl.BlockSpec((2, L), lambda i: (0, 0)),
                ],
                out_specs=pl.BlockSpec((tile, L), lambda i: (i, 0)),
            ),
            compiler_params=pltpu.CompilerParams(
                dimension_semantics=("parallel",),
                vmem_limit_bytes=vmem_limit),
            cost_estimate=cost,
        )(xp, seg2, gb)

        out2 = out.reshape(n_pad, c)
        if n_pad != n:
            out2 = out2[:n]
    else:
        # -------------- non-matmul fallback (large / unpackable C) ------------
        tile = _row_tile(n, c, block_rows)
        grid = (pl.cdiv(n, tile),)
        gb = jnp.stack([gamma32, beta32])                      # (2, c)

        vmem_limit = int(min(40 << 20,
                             max(16 << 20,
                                 4 * tile * c * itemsize + 10 * tile * c * 4)))
        cost = pl.CostEstimate(
            flops=10 * n * c, transcendentals=n * c,
            bytes_accessed=2 * n * c * itemsize + 2 * c * 4)

        out2 = pl.pallas_call(
            functools.partial(_reduce_ln_kernel, inv_c=1.0 / c),
            out_shape=jax.ShapeDtypeStruct((n, c), out_dtype),
            grid_spec=pltpu.PrefetchScalarGridSpec(
                num_scalar_prefetch=0,
                grid=grid,
                in_specs=[
                    pl.BlockSpec((tile, c), lambda i: (i, 0)),
                    pl.BlockSpec((2, c), lambda i: (0, 0)),
                ],
                out_specs=pl.BlockSpec((tile, c), lambda i: (i, 0)),
            ),
            compiler_params=pltpu.CompilerParams(
                dimension_semantics=("parallel",),
                vmem_limit_bytes=vmem_limit),
            cost_estimate=cost,
        )(x2, gb)

    return out2.reshape(orig_shape)


if __name__ == "__main__":
    key = jax.random.PRNGKey(0)

    num_features = 32
    b, v = 2, 8

    kg, kb, kx = jax.random.split(key, 3)
    gamma = 1.0 + 0.5 * jax.random.normal(kg, (num_features,), jnp.float32)
    beta = 0.1 * jax.random.normal(kb, (num_features,), jnp.float32)

    def ref_ln(xa, g, bt):
        x32 = xa.astype(jnp.float32)
        mean = jnp.mean(x32, axis=-1, keepdims=True)
        var = jnp.mean((x32 - mean) ** 2, axis=-1, keepdims=True)
        return ((x32 - mean) / jnp.sqrt(var + EPS) * g + bt).astype(xa.dtype)

    # 3-D module path (b, v, c): packed lane-dense MXU kernel.
    x = jax.random.normal(kx, (b, v, num_features), dtype=jnp.float32)
    y = mylayernorm_forward(x, gamma, beta)
    jax.block_until_ready(y)
    assert y.shape == x.shape and y.dtype == x.dtype
    assert jnp.allclose(y, ref_ln(x, gamma, beta), atol=5e-5, rtol=5e-5), "3-D mismatch"

    # 2-D, multi-step grid with a ragged last block.
    x2 = jax.random.normal(jax.random.PRNGKey(1), (4100, num_features), jnp.float32)
    y2 = mylayernorm_forward(x2, gamma, beta)
    jax.block_until_ready(y2)
    assert jnp.allclose(y2, ref_ln(x2, gamma, beta), atol=5e-5, rtol=5e-5), "2-D mismatch"

    # Row count not a multiple of the lane pack -> padded rows, still lane-dense.
    x3 = jax.random.normal(jax.random.PRNGKey(2), (17, num_features), jnp.float32)
    y3 = mylayernorm_forward(x3, gamma, beta)
    jax.block_until_ready(y3)
    assert jnp.allclose(y3, ref_ln(x3, gamma, beta), atol=5e-5, rtol=5e-5), "odd-N mismatch"

    # bf16 input: bf16 `hi` mean shortcut, bf16 output.
    xb = jax.random.normal(jax.random.PRNGKey(3), (b, v, num_features), jnp.bfloat16)
    yb = mylayernorm_forward(xb, gamma, beta)
    jax.block_until_ready(yb)
    assert jnp.allclose(yb.astype(jnp.float32),
                        ref_ln(xb, gamma, beta).astype(jnp.float32),
                        atol=5e-2, rtol=5e-2), "bf16 mismatch"

    # Large / unpackable feature dim -> non-matmul (XLU reduction) fallback.
    cf = 300
    g4 = 1.0 + 0.1 * jax.random.normal(jax.random.PRNGKey(4), (cf,), jnp.float32)
    b4 = 0.1 * jax.random.normal(jax.random.PRNGKey(5), (cf,), jnp.float32)
    x4 = jax.random.normal(jax.random.PRNGKey(6), (64, cf), jnp.float32)
    y4 = mylayernorm_forward(x4, g4, b4)
    jax.block_until_ready(y4)
    assert jnp.allclose(y4, ref_ln(x4, g4, b4), atol=5e-5, rtol=5e-5), "large-C mismatch"

    print("KERNEL_OK")
</pallas_src>

<mosaic_0001>
module attributes {stable_mosaic.version = 11 : i64} {
  func.func @_packed_ln_kernel(%arg0: i32, %arg1: memref<4x128xf32, #tpu.memory_space<vmem>>, %arg2: memref<256x128xbf16, #tpu.memory_space<vmem>>, %arg3: memref<2x128xf32, #tpu.memory_space<vmem>>, %arg4: memref<4x128xf32, #tpu.memory_space<vmem>>) attributes {dimension_semantics = [#tpu.dimension_semantics<parallel>], iteration_bounds = array<i64: 1>, scalar_prefetch = 0 : i64, scratch_operands = 0 : i64, tpu.core_type = #tpu.core_type<tc>, window_params = [{transform_indices = @transform_0, window_bounds = array<i64: 4, 128>}, {pipeline_mode = #tpu.pipeline_mode<synchronous>, transform_indices = @transform_1, window_bounds = array<i64: 256, 128>}, {pipeline_mode = #tpu.pipeline_mode<synchronous>, transform_indices = @transform_2, window_bounds = array<i64: 2, 128>}, {transform_indices = @transform_3, window_bounds = array<i64: 4, 128>}]} {
    %c0 = arith.constant 0 : index
    %c0_0 = arith.constant 0 : index
    %0 = vector.load %arg2[%c0, %c0_0] : memref<256x128xbf16, #tpu.memory_space<vmem>>, vector<256x128xbf16>
    %c0_1 = arith.constant 0 : index
    %c0_2 = arith.constant 0 : index
    %1 = vector.load %arg3[%c0_1, %c0_2] : memref<2x128xf32, #tpu.memory_space<vmem>>, vector<2x128xf32>
    %c0_3 = arith.constant 0 : index
    %c0_4 = arith.constant 0 : index
    %2 = vector.load %arg1[%c0_3, %c0_4] : memref<4x128xf32, #tpu.memory_space<vmem>>, vector<4x128xf32>
    %3 = arith.truncf %2 : vector<4x128xf32> to vector<4x128xbf16>
    %4 = arith.extf %3 : vector<4x128xbf16> to vector<4x128xf32>
    %5 = arith.subf %2, %4 : vector<4x128xf32>
    %6 = arith.truncf %5 : vector<4x128xf32> to vector<4x128xbf16>
    %7 = tpu.concatenate %3, %6 in 1 : vector<4x128xbf16>, vector<4x128xbf16> -> vector<4x256xbf16>
    %cst = arith.constant dense<0.000000e+00> : vector<4x128xf32>
    %8 = tpu.matmul %7, %0, %cst {dimension_numbers = #tpu.dot_dimension_numbers<[1], [0], [0], [1], [0, 0, 1, 1], [], []>} : vector<4x256xbf16>, vector<256x128xbf16>, vector<4x128xf32> -> vector<4x128xf32>
    %cst_5 = arith.constant 3.125000e-02 : f32
    %9 = vector.broadcast %cst_5 : f32 to vector<4x128xf32>
    %10 = arith.mulf %8, %9 : vector<4x128xf32>
    %11 = arith.subf %2, %10 : vector<4x128xf32>
    %12 = arith.mulf %11, %11 : vector<4x128xf32>
    %13 = arith.truncf %12 : vector<4x128xf32> to vector<4x128xbf16>
    %14 = arith.extf %13 : vector<4x128xbf16> to vector<4x128xf32>
    %15 = arith.subf %12, %14 : vector<4x128xf32>
    %16 = arith.truncf %15 : vector<4x128xf32> to vector<4x128xbf16>
    %17 = tpu.concatenate %13, %16 in 1 : vector<4x128xbf16>, vector<4x128xbf16> -> vector<4x256xbf16>
    %cst_6 = arith.constant dense<0.000000e+00> : vector<4x128xf32>
    %18 = tpu.matmul %17, %0, %cst_6 {dimension_numbers = #tpu.dot_dimension_numbers<[1], [0], [0], [1], [0, 0, 1, 1], [], []>} : vector<4x256xbf16>, vector<256x128xbf16>, vector<4x128xf32> -> vector<4x128xf32>
    %cst_7 = arith.constant 3.125000e-02 : f32
    %19 = vector.broadcast %cst_7 : f32 to vector<4x128xf32>
    %20 = arith.mulf %18, %19 : vector<4x128xf32>
    %cst_8 = arith.constant 9.99999974E-6 : f32
    %21 = vector.broadcast %cst_8 : f32 to vector<4x128xf32>
    %22 = arith.addf %20, %21 : vector<4x128xf32>
    %23 = math.rsqrt %22 : vector<4x128xf32>
    %24 = arith.mulf %11, %23 : vector<4x128xf32>
    %25 = vector.extract_strided_slice %1 {offsets = [0, 0], sizes = [1, 128], strides = [1, 1]} : vector<2x128xf32> to vector<1x128xf32>
    %26 = vector.broadcast %25 : vector<1x128xf32> to vector<4x128xf32>
    %27 = arith.mulf %24, %26 : vector<4x128xf32>
    %28 = vector.extract_strided_slice %1 {offsets = [1, 0], sizes = [1, 128], strides = [1, 1]} : vector<2x128xf32> to vector<1x128xf32>
    %29 = vector.broadcast %28 : vector<1x128xf32> to vector<4x128xf32>
    %30 = arith.addf %27, %29 : vector<4x128xf32>
    %c0_9 = arith.constant 0 : index
    %c0_10 = arith.constant 0 : index
    %31 = vector.load %arg4[%c0_9, %c0_10] : memref<4x128xf32, #tpu.memory_space<vmem>>, vector<4x128xf32>
    tpu.vector_store %arg4[%c0_9, %c0_10], %30 {strides = array<i32>} : memref<4x128xf32, #tpu.memory_space<vmem>>, vector<4x128xf32>,
    return
  }
  func.func @transform_0(%arg0: i32) -> (i32, i32) {
    %c0_i32 = arith.constant 0 : i32
    %c0_i32_0 = arith.constant 0 : i32
    return %arg0, %c0_i32 : i32, i32
  }
  func.func @transform_1(%arg0: i32) -> (i32, i32) {
    %c0_i32 = arith.constant 0 : i32
    %c0_i32_0 = arith.constant 0 : i32
    %c0_i32_1 = arith.constant 0 : i32
    return %c0_i32, %c0_i32_0 : i32, i32
  }
  func.func @transform_2(%arg0: i32) -> (i32, i32) {
    %c0_i32 = arith.constant 0 : i32
    %c0_i32_0 = arith.constant 0 : i32
    %c0_i32_1 = arith.constant 0 : i32
    return %c0_i32, %c0_i32_0 : i32, i32
  }
  func.func @transform_3(%arg0: i32) -> (i32, i32) {
    %c0_i32 = arith.constant 0 : i32
    %c0_i32_0 = arith.constant 0 : i32
    return %arg0, %c0_i32 : i32, i32
  }
}

</mosaic_0001>

<bundles_post_ra>
// kernel: tile.13
= control target key start
LH: loop header
LB: loop body
LE: loop exit
PB: predicated region body
PF: predicated region fallthrough
CT: control target
= control target key end

     0   :  { %s22_s0 = inlined_call_operand.vmem [shape: f32[32], index: 0, kind: input, shape index: {}]   ;;  %s23_s1 = inlined_call_operand.vmem [shape: f32[4,32], index: 1, kind: output, shape index: {}]  }
   0x1   :  { %v4_v0 = vld [vmem:[%s22_s0] ss:$0 sm:$0xff] }
   0x2   :  { %5 = vst [vmem:[%s23_s1] sm:$0xf] %v4_v0 }

// kernel: tile.18
= control target key start
LH: loop header
LB: loop body
LE: loop exit
PB: predicated region body
PF: predicated region fallthrough
CT: control target
= control target key end

     0   :  { %vm7_vm0 = vcmask 261120   ;;  %s37_s8 = smov 32   ;;  %s38_s9 = smov 64   ;;  %vm13_vm1 = vcmask 1048320   ;;  %vm19_vm2 = vcmask 785920   ;;  %vm25_vm3 = vcmask 523520   ;;  %s55_s0 = inlined_call_operand.vmem [shape: f32[4,32], index: 0, kind: input, shape index: {}]   ;;  %s56_s1 = inlined_call_operand.vmem [shape: f32[1,128], index: 1, kind: output, shape index: {}]  }
   0x1   :  { %v4_v0 = vld [vmem:[%s55_s0] sm:$0xf]  ;;  %s36_s0 = smov 96  }
   0x2   :  { %5 = vst [vmem:[#allocation1] sm:$0xf] %v4_v0 }
   0x9   :  { %v10_v1 = vld [vmem:[#allocation1 + $0x3] sm:$0x1]   ;;  %v22_v2 = vld [vmem:[#allocation1 + $0x1] sm:$0x1]   ;;  %v6_v3 = vld [vmem:[#allocation1] sm:$0x1]  }
   0xa   :  { %11 = vrot.lane.b32.xlu0 %v10_v1, %s36_s0  ;;  %23 = vrot.lane.b32.xlu1 %v22_v2, %s37_s8  ;;  %v16_v4 = vld [vmem:[#allocation1 + $0x2] sm:$0x1]   ;;  %8 = vst.msk [vmem:[#allocation0] sm:$0x1] %vm7_vm0, %v6_v3  }
   0xe   :  { %17 = vrot.lane.b32.xlu0 %v16_v4, %s38_s9 }
  0x7c   :  { %v12_v5 = vpop.permute.xlu0 %11   ;;  %v24_v6 = vpop.permute.xlu1 %23  }
  0x7d   :  { %14 = vst.msk [vmem:[#allocation0] sm:$0x1] %vm13_vm1, %v12_v5  }
  0x80   :  { %v18_v7 = vpop.permute.xlu0 %17  }
  0x81   :  { %20 = vst.msk [vmem:[#allocation0] sm:$0x1] %vm19_vm2, %v18_v7  }
  0x82   :  { %26 = vst.msk [vmem:[#allocation0] sm:$0x1] %vm25_vm3, %v24_v6  }
  0x89   :  { %v30_v8 = vld [vmem:[#allocation0] sm:$0x1] }
  0x8a   :  { %32 = vst [vmem:[%s56_s1] sm:$0x1] %v30_v8 }

// kernel: mylayernorm_forward.1
= control target key start
LH: loop header
LB: loop body
LE: loop exit
PB: predicated region body
PF: predicated region fallthrough
CT: control target
= control target key end

     0   :  { %v240_v39 = vlaneseq  ;;  %s410_s1 = inlined_call_operand.vmem [shape: bf16[256,128], index: 1, kind: input, shape index: {}]   ;;  %s411_s0 = inlined_call_operand.vmem [shape: f32[4,128], index: 0, kind: input, shape index: {}]   ;;  %s412_s2 = inlined_call_operand.vmem [shape: f32[2,128], index: 2, kind: input, shape index: {}]   ;;  %s413_s3 = inlined_call_operand.vmem [shape: f32[4,128], index: 3, kind: output, shape index: {}]  }
   0x1   :  { %v315_v0 = vld [vmem:[%s410_s1 + $0x40] sm:$0xff]   ;;  %v317_v2 = vld [vmem:[%s410_s1 + $0x48] sm:$0xff]   ;;  %v319_v4 = vld [vmem:[%s410_s1 + $0x50] sm:$0xff]  }
   0x2   :  { %v316_v1 = vld [vmem:[%s410_s1] sm:$0xff]   ;;  %271 = vmatprep.subr.bf16.mxu0 %v315_v0  ;;  %293 = vmatprep.subr.bf16.mxu1 %v315_v0  ;;  %v318_v3 = vld [vmem:[%s410_s1 + $0x8] sm:$0xff]   ;;  %v320_v5 = vld [vmem:[%s410_s1 + $0x10] sm:$0xff]   ;;  %v241_v41 = vshrl.u32 %v240_v39, 7 }
   0x3   :  { %272 = vmatpush3.bf16.msra.mxu0 %v316_v1  ;;  %294 = vmatpush3.bf16.msra.mxu1 %v316_v1  ;;  %v321_v6 = vld [vmem:[%s410_s1 + $0x58] sm:$0xff]   ;;  %v323_v8 = vld [vmem:[%s410_s1 + $0x60] sm:$0xff]   ;;  %v325_v10 = vld [vmem:[%s410_s1 + $0x68] sm:$0xff]  }
   0x4   :  { %273 = vmatprep.subr.bf16.mxu0 %v317_v2  ;;  %295 = vmatprep.subr.bf16.mxu1 %v317_v2  ;;  %v322_v7 = vld [vmem:[%s410_s1 + $0x18] sm:$0xff]   ;;  %v324_v9 = vld [vmem:[%s410_s1 + $0x20] sm:$0xff]   ;;  %v326_v13 = vld [vmem:[%s410_s1 + $0x28] sm:$0xff]   ;;  %v242_v42 = vsub.s32 0, %v241_v41  ;;  %v247_v44 = vsub.s32 1, %v241_v41 }
   0x5   :  { %v48_v11 = vld [vmem:[%s411_s0] sm:$0xf]  ;;  %v327_v15 = vld [vmem:[%s410_s1 + $0x70] sm:$0xff]   ;;  %v329_v19 = vld [vmem:[%s410_s1 + $0x78] sm:$0xff]  }
   0x6   :  { %v49_v12 = vpack.c.bf16 %v48_v11, %v48_v11  ;;  %v328_v17 = vld [vmem:[%s410_s1 + $0x30] sm:$0xff]   ;;  %v330_v20 = vld [vmem:[%s410_s1 + $0x38] sm:$0xff]   ;;  %v47_v43 = vld [vmem:[%s412_s2] sm:$0x3] }
   0x7   :  { %274 = vmatpush3.bf16.msra.mxu0 %v318_v3  ;;  %296 = vmatpush3.bf16.msra.mxu1 %v318_v3  ;;  %v243_v45 = vrot.slane %v47_v43, %v242_v42  ;;  %v248_v48 = vrot.slane %v47_v43, %v247_v44 }
   0x8   :  { %275 = vmatprep.subr.bf16.mxu0 %v319_v4  ;;  %297 = vmatprep.subr.bf16.mxu1 %v319_v4  ;;  %v50_v14 = vunpack.c.l.bf16 %v49_v12 }
   0xa   :  { %v51_v16 = vsub.f32 %v48_v11, %v50_v14 }
   0xb   :  { %276 = vmatpush3.bf16.msra.mxu0 %v320_v5  ;;  %298 = vmatpush3.bf16.msra.mxu1 %v320_v5 }
   0xc   :  { %277 = vmatprep.subr.bf16.mxu0 %v321_v6  ;;  %299 = vmatprep.subr.bf16.mxu1 %v321_v6  ;;  %v52_v18 = vpack.c.bf16 %v51_v16, %v51_v16 }
   0xe   :  { %181 = vmatprep.mubr.bf16.mxu0 %v52_v18 }
   0xf   :  { %278 = vmatpush3.bf16.msra.mxu0 %v322_v7  ;;  %300 = vmatpush3.bf16.msra.mxu1 %v322_v7 }
  0x10   :  { %279 = vmatprep.subr.bf16.mxu0 %v323_v8  ;;  %301 = vmatprep.subr.bf16.mxu1 %v323_v8 }
  0x13   :  { %280 = vmatpush3.bf16.msra.mxu0 %v324_v9  ;;  %302 = vmatpush3.bf16.msra.mxu1 %v324_v9 }
  0x14   :  { %281 = vmatprep.subr.bf16.mxu0 %v325_v10  ;;  %303 = vmatprep.subr.bf16.mxu1 %v325_v10 }
  0x17   :  { %282 = vmatpush3.bf16.msra.mxu0 %v326_v13  ;;  %304 = vmatpush3.bf16.msra.mxu1 %v326_v13 }
  0x18   :  { %283 = vmatprep.subr.bf16.mxu0 %v327_v15  ;;  %305 = vmatprep.subr.bf16.mxu1 %v327_v15 }
  0x1b   :  { %284 = vmatpush3.bf16.msra.mxu0 %v328_v17  ;;  %306 = vmatpush3.bf16.msra.mxu1 %v328_v17 }
  0x1c   :  { %285 = vmatprep.subr.bf16.mxu0 %v329_v19  ;;  %307 = vmatprep.subr.bf16.mxu1 %v329_v19 }
  0x1f   :  { %286 = vmatpush3.bf16.msra.mxu0 %v330_v20  ;;  %308 = vmatpush3.bf16.msra.mxu1 %v330_v20 }
  0x22   :  { %182 = vmatmul.mubr.bf16.vlgmr.msra.gmra.mrb[0].mxu0 %v49_v12 }
  0xf5   :  { %v287_v21 = vpop.f32.mrb[0].mxu0 }
  0xf6   :  { %v288_v22 = vpop.f32.mrb[1].mxu0 }
  0xf7   :  { %v289_v23 = vadd.f32 %v288_v22, %v287_v21  ;;  %v290_v24 = vpop.f32.mrb[2].mxu0 }
  0xf8   :  { %v291_v25 = vpop.f32.mrb[3].mxu0 }
  0xf9   :  { %v189_v26 = vmul.f32 0.03125, %v289_v23 }
  0xfb   :  { %v190_v27 = vsub.f32 %v48_v11, %v189_v26 }
  0xfd   :  { %v191_v28 = vmul.f32 %v190_v27, %v190_v27 }
  0xff   :  { %v192_v29 = vpack.c.bf16 %v191_v28, %v191_v28 }
 0x101   :  { %v193_v30 = vunpack.c.l.bf16 %v192_v29 }
 0x103   :  { %v194_v31 = vsub.f32 %v191_v28, %v193_v30 }
 0x105   :  { %v195_v32 = vpack.c.bf16 %v194_v31, %v194_v31 }
 0x107   :  { %228 = vmatprep.mubr.bf16.mxu1 %v195_v32 }
 0x108   :  { %229 = vmatmul.mubr.bf16.vlgmr.msra.gmra.mrb[0].mxu1 %v192_v29 }
 0x1db   :  { %v309_v33 = vpop.f32.mrb[0].mxu1 }
 0x1dc   :  { %v310_v34 = vpop.f32.mrb[1].mxu1 }
 0x1dd   :  { %v311_v35 = vadd.f32 %v310_v34, %v309_v33  ;;  %v312_v36 = vpop.f32.mrb[2].mxu1 }
 0x1de   :  { %v313_v37 = vpop.f32.mrb[3].mxu1 }
 0x1df   :  { %v236_v38 = vmul.f32 0.03125, %v311_v35 }
 0x1e1   :  { %v237_v40 = vadd.f32 1e-05, %v236_v38 }
 0x1e3   :  { %331 = vrsqrt.f32 %v237_v40 }
 0x1ed   :  { %v332_v46 = vpop.eup %331 }
 0x1ee   :  { %v239_v47 = vmul.f32 %v332_v46, %v190_v27 }
 0x1f0   :  { %v244_v49 = vmul.f32 %v243_v45, %v239_v47 }
 0x1f2   :  { %v249_v50 = vadd.f32 %v248_v48, %v244_v49 }
 0x1f4   :  { %250 = vst [vmem:[%s413_s3] sm:$0xf] %v249_v50 }

</bundles_post_ra>
